<compile_context>
chip_gen: v7x
topology: tpu7x:2x2x1
jax: 0.10.0
libtpu: 0.0.40
codegen_flags: <defaults>
</compile_context>

<pallas_src>
import functools
import math

import numpy as np

import jax
import jax.numpy as jnp
from jax import lax
from jax.experimental import pallas as pl
from jax.experimental.pallas import tpu as pltpu

N_BEAT_FRACTIONS = 10
N_UNPITCHED_FEATURES = 2
N_UNPITCHED_NOTES = 47
LEAKY_SLOPE = 0.01  # torch.nn.functional.leaky_relu default

NOTES_DIM = N_UNPITCHED_NOTES * N_UNPITCHED_FEATURES * 4   # 376
OUT_DIM = N_UNPITCHED_NOTES * N_UNPITCHED_FEATURES         # 94


def _round_up(x, m):
    return ((x + m - 1) // m) * m


NOTES_PAD_DIM = _round_up(NOTES_DIM, 128)                  # 384 (lane dense)


def get_mean_size(*values, factor=1):
    return math.ceil(sum(values) / len(values) * factor)


# ----------------------------- Pallas kernel -------------------------------

def _fused_kernel(style_ref, rhythm_ref, wsr_ref, wn_ref, wbig_ref, vec_ref,
                  epack_ref, o_ref, *, sl, rl, s_al, hid_al,
                  off_bs, off_br, off_bn, off_bl, off_sc):
    f32, bf16 = jnp.float32, jnp.bfloat16
    nf = N_BEAT_FRACTIONS
    hid = nf * sl
    s_size = style_ref.shape[-1]
    r_size = rhythm_ref.shape[-1]
    nbb = rhythm_ref.shape[1]              # bars * beats
    rows = nbb * nf
    leaky = lambda v: jnp.maximum(v, LEAKY_SLOPE * v)      # one mul + max

    # --- style branch: Linear + leaky for this batch element ----------------
    # Replicate the single style row to the 10 fraction rows (sublane
    # broadcast, no matmul), then mask row f to its own SL-wide chunk; the
    # row-tiled notes weight below then yields exactly x1[b, f] @ wn[:SL].
    sty = jnp.broadcast_to(style_ref[0], (nf, s_size))                 # (10, S)
    h1 = jnp.dot(sty, wsr_ref[0:s_size, 0:hid], preferred_element_type=f32)
    h1 = leaky(h1 + vec_ref[:, off_bs:off_bs + hid])                   # (10, 10*SL)
    fr = lax.broadcasted_iota(jnp.int32, (nf, hid), 0)
    ck = lax.broadcasted_iota(jnp.int32, (nf, hid), 1)
    hs = jnp.where((ck >= fr * sl) & (ck < fr * sl + sl), h1, 0.0)
    c1 = jnp.dot(hs.astype(bf16), wn_ref[0:hid, :],
                 preferred_element_type=f32)                           # (10, 384)

    # --- rhythm branch: Linear + leaky + rhythm half of notes_linear --------
    h2 = jnp.dot(rhythm_ref[0], wsr_ref[s_al:s_al + r_size, 0:rl],
                 preferred_element_type=f32)
    h2 = leaky(h2 + vec_ref[:, off_br:off_br + rl])                    # (bb, RL)
    c2 = jnp.dot(h2.astype(bf16), wn_ref[hid_al:hid_al + rl, :],
                 preferred_element_type=f32)                           # (bb, 384)

    # --- broadcast-concat + notes_linear == broadcast-add of the partials ---
    # Tiny batch-independent one-hots (rows x 10, rows x bb) expand both
    # partial products to the bars*beats*10 rows of this batch element.
    e_frac = epack_ref[:, 0:nf]                          # one-hot of (row % 10)
    e_beat = epack_ref[:, nf:nf + nbb]                   # one-hot of (row // 10)
    z = (jnp.dot(e_frac, c1.astype(bf16), preferred_element_type=f32)
         + jnp.dot(e_beat, c2.astype(bf16), preferred_element_type=f32)
         + vec_ref[:, off_bn:off_bn + NOTES_PAD_DIM])
    h = leaky(z)                                                       # (rows, 384)

    # --- per-note Linear(8 -> 2) as block-diagonal matmul + activations -----
    y = jnp.dot(h.astype(bf16), wbig_ref[...], preferred_element_type=f32)
    y = y + vec_ref[:, off_bl:off_bl + OUT_DIM]
    o_ref[0] = jax.nn.sigmoid(y) * vec_ref[:, off_sc:off_sc + OUT_DIM]


# ------------------- shape-dependent one-hot constants ---------------------

@functools.lru_cache(maxsize=None)
def _expansion_onehots(bars_beats):
    """(bars*beats*10, 10 + bars*beats) bf16 one-hots; batch independent."""
    nf = N_BEAT_FRACTIONS
    rows = bars_beats * nf
    r = np.arange(rows)
    e = np.zeros((rows, nf + bars_beats), np.float32)
    e[r, r % nf] = 1.0                    # row r selects c1[r % 10]
    e[r, nf + r // nf] = 1.0              # row r selects c2[r // 10]
    return jnp.asarray(e, jnp.bfloat16)


# ------------------------------ params --------------------------------------

def init_params(key, style_size, rhythm_size):
    style_linear_size = get_mean_size(style_size, N_UNPITCHED_FEATURES, factor=0.5)
    rhythm_linear_size = get_mean_size(rhythm_size, N_UNPITCHED_FEATURES, factor=1)
    notes_linear_size = N_UNPITCHED_FEATURES * 4

    def linear(k, fan_in, fan_out):
        k1, k2 = jax.random.split(k)
        bound = 1.0 / math.sqrt(fan_in)
        w = jax.random.uniform(k1, (fan_in, fan_out), jnp.float32, -bound, bound)
        b = jax.random.uniform(k2, (fan_out,), jnp.float32, -bound, bound)
        return w, b

    ks = jax.random.split(key, 4)
    ws, bs = linear(ks[0], style_size, N_BEAT_FRACTIONS * style_linear_size)
    wr, br = linear(ks[1], rhythm_size, rhythm_linear_size)
    wn, bn = linear(ks[2], style_linear_size + rhythm_linear_size,
                    N_UNPITCHED_NOTES * notes_linear_size)
    wl, bl = linear(ks[3], notes_linear_size, N_UNPITCHED_FEATURES)

    sl, rl = style_linear_size, rhythm_linear_size
    hid = N_BEAT_FRACTIONS * sl
    notes_pad = NOTES_PAD_DIM - NOTES_DIM                    # 8

    # ---- small style/rhythm weights in one f32 slab (tiny matmuls stay f32)
    s_al = _round_up(style_size, 16)
    wsr = jnp.zeros((s_al + rhythm_size, max(hid, rl)), jnp.float32)
    wsr = wsr.at[0:style_size, 0:hid].set(ws)
    wsr = wsr.at[s_al:s_al + rhythm_size, 0:rl].set(wr)

    # ---- notes_linear halves in one bf16 slab, lane-padded 376 -> 384 ------
    hid_al = _round_up(hid, 16)
    wn_style = jnp.pad(wn[:sl], ((0, 0), (0, notes_pad)))            # (SL, 384)
    wn_rhythm = jnp.pad(wn[sl:], ((0, 0), (0, notes_pad)))           # (RL, 384)
    wn_cat = jnp.zeros((hid_al + rl, NOTES_PAD_DIM), jnp.bfloat16)
    wn_cat = wn_cat.at[0:hid, :].set(
        jnp.tile(wn_style, (N_BEAT_FRACTIONS, 1)).astype(jnp.bfloat16))
    wn_cat = wn_cat.at[hid_al:hid_al + rl, :].set(wn_rhythm.astype(jnp.bfloat16))

    # ---- block-diagonal final Linear(8->2): (384, 94), unpadded N ----------
    wbig = jnp.kron(jnp.eye(N_UNPITCHED_NOTES, dtype=jnp.float32), wl)   # (376, 94)
    wbig = jnp.pad(wbig, ((0, notes_pad), (0, 0))).astype(jnp.bfloat16)  # (384, 94)

    # ---- one lane-padded f32 slab for all 1-row constants ------------------
    off_bs = 0
    off_br = _round_up(hid, 128)
    off_bn = off_br + _round_up(rl, 128)
    off_bl = off_bn + NOTES_PAD_DIM
    off_sc = off_bl + 128
    vec_len = off_sc + 128
    vec = jnp.zeros((1, vec_len), jnp.float32)
    vec = vec.at[0, off_bs:off_bs + hid].set(bs)
    vec = vec.at[0, off_br:off_br + rl].set(br)
    vec = vec.at[0, off_bn:off_bn + NOTES_DIM].set(bn)
    vec = vec.at[0, off_bl:off_bl + OUT_DIM].set(jnp.tile(bl, N_UNPITCHED_NOTES))
    vec = vec.at[0, off_sc:off_sc + OUT_DIM].set(
        jnp.tile(jnp.array([6.0, 1.0], jnp.float32), N_UNPITCHED_NOTES))

    derived = {
        "wsr": wsr, "wn_cat": wn_cat, "wbig": wbig, "vec": vec,
        "sl": sl, "rl": rl, "s_al": s_al, "hid_al": hid_al,
        "offs": (off_bs, off_br, off_bn, off_bl, off_sc),
    }
    return {
        "style": (ws, bs), "rhythm": (wr, br), "notes": (wn, bn), "final": (wl, bl),
        "derived": derived,
    }


# ------------------------------ forward -------------------------------------

def unpitched_style_applier(style, rhythm, params):
    """Pallas implementation of UnpitchedStyleApplier.forward (one fused kernel)."""
    d = params["derived"]
    sl, rl = d["sl"], d["rl"]
    off_bs, off_br, off_bn, off_bl, off_sc = d["offs"]
    B, s_size = style.shape
    bars, beats, r_size = rhythm.shape[1], rhythm.shape[2], rhythm.shape[-1]
    nbb = bars * beats
    rows = nbb * N_BEAT_FRACTIONS
    hid = N_BEAT_FRACTIONS * sl

    style3 = style.reshape(B, 1, s_size)
    rhythm3 = rhythm.reshape(B, nbb, r_size)
    epack = _expansion_onehots(nbb)
    wsr, wn_cat, wbig, vec = d["wsr"], d["wn_cat"], d["wbig"], d["vec"]

    kernel = functools.partial(
        _fused_kernel, sl=sl, rl=rl, s_al=d["s_al"], hid_al=d["hid_al"],
        off_bs=off_bs, off_br=off_br, off_bn=off_bn, off_bl=off_bl, off_sc=off_sc)

    flops = 2 * B * (N_BEAT_FRACTIONS * s_size * hid
                     + N_BEAT_FRACTIONS * hid * NOTES_PAD_DIM
                     + nbb * r_size * rl
                     + nbb * rl * NOTES_PAD_DIM
                     + rows * (N_BEAT_FRACTIONS + nbb) * NOTES_PAD_DIM
                     + rows * NOTES_PAD_DIM * OUT_DIM)
    bytes_accessed = (4 * (style.size + rhythm.size + B * rows * OUT_DIM
                           + wsr.size + vec.size)
                      + 2 * (wn_cat.size + wbig.size + epack.size))

    out = pl.pallas_call(
        kernel,
        out_shape=jax.ShapeDtypeStruct((B, rows, OUT_DIM), jnp.float32),
        grid=(B,),
        in_specs=[
            pl.BlockSpec((1, 1, s_size), lambda b: (b, 0, 0)),
            pl.BlockSpec((1, nbb, r_size), lambda b: (b, 0, 0)),
            # weights / constants: full blocks + constant index_map => resident
            pl.BlockSpec(wsr.shape, lambda b: (0, 0)),
            pl.BlockSpec(wn_cat.shape, lambda b: (0, 0)),
            pl.BlockSpec(wbig.shape, lambda b: (0, 0)),
            pl.BlockSpec(vec.shape, lambda b: (0, 0)),
            pl.BlockSpec(epack.shape, lambda b: (0, 0)),
        ],
        out_specs=pl.BlockSpec((1, rows, OUT_DIM), lambda b: (b, 0, 0)),
        compiler_params=pltpu.CompilerParams(
            dimension_semantics=("parallel",),
            vmem_limit_bytes=32 * 1024 * 1024),
        cost_estimate=pl.CostEstimate(
            flops=flops,
            transcendentals=B * rows * OUT_DIM,
            bytes_accessed=bytes_accessed),
    )(style3, rhythm3, wsr, wn_cat, wbig, vec, epack)

    # Unpadded 94-lane output: only a (free) reshape here, no HBM slice pass.
    out = out.reshape(B, bars, beats, N_BEAT_FRACTIONS,
                      N_UNPITCHED_NOTES, N_UNPITCHED_FEATURES)
    return out[:, None]   # unsqueeze(1) -> (B, 1, bars, beats, 10, 47, 2)


# ---------------------- pure-JAX reference (for check) ----------------------

def cat_with_broadcast(tensors, axis):
    nd = max(t.ndim for t in tensors)
    tensors = [t.reshape((1,) * (nd - t.ndim) + t.shape) for t in tensors]
    axis = axis % nd
    bshape = jnp.broadcast_shapes(
        *[tuple(1 if i == axis else s for i, s in enumerate(t.shape)) for t in tensors]
    )
    outs = []
    for t in tensors:
        shp = list(bshape)
        shp[axis] = t.shape[axis]
        outs.append(jnp.broadcast_to(t, shp))
    return jnp.concatenate(outs, axis=axis)


def reference(style, rhythm, params):
    ws, bs = params["style"]
    wr, br = params["rhythm"]
    wn, bn = params["notes"]
    wl, bl = params["final"]
    leaky = lambda v: jnp.where(v >= 0, v, LEAKY_SLOPE * v)

    x = leaky(style @ ws + bs)
    x1 = x.reshape(x.shape[0], 1, 1, N_BEAT_FRACTIONS, -1)
    x2 = leaky(rhythm @ wr + br)
    x = cat_with_broadcast([x1, x2], -1)
    x = leaky(x @ wn + bn)
    x = x.reshape(*x.shape[:4], N_UNPITCHED_NOTES, -1)
    x = x @ wl + bl
    dur = jax.nn.sigmoid(x[..., :1]) * 6.0
    vel = jax.nn.sigmoid(x[..., 1:2])
    x = jnp.concatenate([dur, vel], axis=5)
    return x[:, None]


# --------------------------------- main --------------------------------------

if __name__ == "__main__":
    style_size = 16
    rhythm_size = 12
    batch, bars, beats = 2, 2, 4

    key = jax.random.PRNGKey(0)
    kp, ks, kr = jax.random.split(key, 3)
    params = init_params(kp, style_size, rhythm_size)

    style = jax.random.normal(ks, (batch, style_size), jnp.float32)
    rhythm = jax.random.normal(kr, (batch, bars, beats, 1, rhythm_size), jnp.float32)

    fwd = jax.jit(lambda s, r: unpitched_style_applier(s, r, params))
    out = jax.block_until_ready(fwd(style, rhythm))

    expected_shape = (batch, 1, bars, beats, N_BEAT_FRACTIONS,
                      N_UNPITCHED_NOTES, N_UNPITCHED_FEATURES)
    assert out.shape == expected_shape, (out.shape, expected_shape)

    ref = jax.block_until_ready(reference(style, rhythm, params))
    max_err = float(jnp.max(jnp.abs(out - ref)))
    # bf16 MXU operands in the kernel vs. a pure-f32 reference => 2e-2 tol.
    assert jnp.allclose(out, ref, rtol=2e-2, atol=2e-2), max_err

    print("KERNEL_OK")
</pallas_src>

<mosaic_0001>
module attributes {stable_mosaic.version = 11 : i64} {
  func.func @_fused_kernel(%arg0: i32, %arg1: memref<1x1x16xf32, #tpu.memory_space<vmem>>, %arg2: memref<1x8x12xf32, #tpu.memory_space<vmem>>, %arg3: memref<28x50xf32, #tpu.memory_space<vmem>>, %arg4: memref<71x384xbf16, #tpu.memory_space<vmem>>, %arg5: memref<384x94xbf16, #tpu.memory_space<vmem>>, %arg6: memref<1x896xf32, #tpu.memory_space<vmem>>, %arg7: memref<80x18xbf16, #tpu.memory_space<vmem>>, %arg8: memref<1x80x94xf32, #tpu.memory_space<vmem>>) attributes {dimension_semantics = [#tpu.dimension_semantics<parallel>], iteration_bounds = array<i64: 2>, scalar_prefetch = 0 : i64, scratch_operands = 0 : i64, tpu.core_type = #tpu.core_type<tc>, window_params = [{transform_indices = @transform_0, window_bounds = array<i64: 1, 1, 16>}, {transform_indices = @transform_1, window_bounds = array<i64: 1, 8, 12>}, {pipeline_mode = #tpu.pipeline_mode<synchronous>, transform_indices = @transform_2, window_bounds = array<i64: 28, 50>}, {pipeline_mode = #tpu.pipeline_mode<synchronous>, transform_indices = @transform_3, window_bounds = array<i64: 71, 384>}, {pipeline_mode = #tpu.pipeline_mode<synchronous>, transform_indices = @transform_4, window_bounds = array<i64: 384, 94>}, {pipeline_mode = #tpu.pipeline_mode<synchronous>, transform_indices = @transform_5, window_bounds = array<i64: 1, 896>}, {pipeline_mode = #tpu.pipeline_mode<synchronous>, transform_indices = @transform_6, window_bounds = array<i64: 80, 18>}, {transform_indices = @transform_7, window_bounds = array<i64: 1, 80, 94>}]} {
    %c0 = arith.constant 0 : index
    %c0_0 = arith.constant 0 : index
    %c0_1 = arith.constant 0 : index
    %0 = vector.load %arg1[%c0, %c0_0, %c0_1] : memref<1x1x16xf32, #tpu.memory_space<vmem>>, vector<1x1x16xf32>
    %1 = vector.shape_cast %0 : vector<1x1x16xf32> to vector<1x16xf32>
    %2 = vector.shape_cast %1 : vector<1x16xf32> to vector<1x16xf32>
    %3 = vector.broadcast %2 : vector<1x16xf32> to vector<10x16xf32>
    %c0_2 = arith.constant 0 : index
    %c0_3 = arith.constant 0 : index
    %4 = vector.load %arg3[%c0_2, %c0_3] : memref<28x50xf32, #tpu.memory_space<vmem>>, vector<16x50xf32>
    %cst = arith.constant dense<0.000000e+00> : vector<10x50xf32>
    %5 = tpu.matmul %3, %4, %cst {dimension_numbers = #tpu.dot_dimension_numbers<[1], [0], [0], [1], [0, 0, 1, 1], [], []>} : vector<10x16xf32>, vector<16x50xf32>, vector<10x50xf32> -> vector<10x50xf32>
    %c0_4 = arith.constant 0 : index
    %c0_5 = arith.constant 0 : index
    %6 = vector.load %arg6[%c0_4, %c0_5] : memref<1x896xf32, #tpu.memory_space<vmem>>, vector<1x50xf32>
    %7 = vector.broadcast %6 : vector<1x50xf32> to vector<10x50xf32>
    %8 = arith.addf %5, %7 : vector<10x50xf32>
    %cst_6 = arith.constant 0.00999999977 : f32
    %9 = vector.broadcast %cst_6 : f32 to vector<10x50xf32>
    %10 = arith.mulf %9, %8 : vector<10x50xf32>
    %11 = arith.maximumf %8, %10 : vector<10x50xf32>
    %12 = tpu.iota {dimensions = array<i32: 0>} : vector<10x50xi32>
    %13 = tpu.iota {dimensions = array<i32: 1>} : vector<10x50xi32>
    %c5_i32 = arith.constant 5 : i32
    %14 = vector.broadcast %c5_i32 : i32 to vector<10x50xi32>
    %15 = arith.muli %12, %14 : vector<10x50xi32>
    %16 = arith.cmpi sge, %13, %15 : vector<10x50xi32>
    %c5_i32_7 = arith.constant 5 : i32
    %17 = vector.broadcast %c5_i32_7 : i32 to vector<10x50xi32>
    %18 = arith.muli %12, %17 : vector<10x50xi32>
    %c5_i32_8 = arith.constant 5 : i32
    %19 = vector.broadcast %c5_i32_8 : i32 to vector<10x50xi32>
    %20 = arith.addi %18, %19 : vector<10x50xi32>
    %21 = arith.cmpi slt, %13, %20 : vector<10x50xi32>
    %22 = arith.andi %16, %21 : vector<10x50xi1>
    %cst_9 = arith.constant 0.000000e+00 : f32
    %23 = vector.broadcast %cst_9 : f32 to vector<10x50xf32>
    %24 = arith.select %22, %11, %23 : vector<10x50xi1>, vector<10x50xf32>
    %25 = arith.truncf %24 : vector<10x50xf32> to vector<10x50xbf16>
    %c0_10 = arith.constant 0 : index
    %c0_11 = arith.constant 0 : index
    %26 = vector.load %arg4[%c0_10, %c0_11] : memref<71x384xbf16, #tpu.memory_space<vmem>>, vector<50x384xbf16>
    %cst_12 = arith.constant dense<0.000000e+00> : vector<10x384xf32>
    %27 = tpu.matmul %25, %26, %cst_12 {dimension_numbers = #tpu.dot_dimension_numbers<[1], [0], [0], [1], [0, 0, 1, 1], [], []>} : vector<10x50xbf16>, vector<50x384xbf16>, vector<10x384xf32> -> vector<10x384xf32>
    %c0_13 = arith.constant 0 : index
    %c0_14 = arith.constant 0 : index
    %c0_15 = arith.constant 0 : index
    %28 = vector.load %arg2[%c0_13, %c0_14, %c0_15] : memref<1x8x12xf32, #tpu.memory_space<vmem>>, vector<1x8x12xf32>
    %29 = vector.shape_cast %28 : vector<1x8x12xf32> to vector<8x12xf32>
    %c16 = arith.constant 16 : index
    %c0_16 = arith.constant 0 : index
    %30 = vector.load %arg3[%c16, %c0_16] : memref<28x50xf32, #tpu.memory_space<vmem>>, vector<12x7xf32>
    %cst_17 = arith.constant dense<0.000000e+00> : vector<8x7xf32>
    %31 = tpu.matmul %29, %30, %cst_17 {dimension_numbers = #tpu.dot_dimension_numbers<[1], [0], [0], [1], [0, 0, 1, 1], [], []>} : vector<8x12xf32>, vector<12x7xf32>, vector<8x7xf32> -> vector<8x7xf32>
    %c0_18 = arith.constant 0 : index
    %c128 = arith.constant 128 : index
    %32 = vector.load %arg6[%c0_18, %c128] : memref<1x896xf32, #tpu.memory_space<vmem>>, vector<1x7xf32>
    %33 = vector.broadcast %32 : vector<1x7xf32> to vector<8x7xf32>
    %34 = arith.addf %31, %33 : vector<8x7xf32>
    %cst_19 = arith.constant 0.00999999977 : f32
    %35 = vector.broadcast %cst_19 : f32 to vector<8x7xf32>
    %36 = arith.mulf %35, %34 : vector<8x7xf32>
    %37 = arith.maximumf %34, %36 : vector<8x7xf32>
    %38 = arith.truncf %37 : vector<8x7xf32> to vector<8x7xbf16>
    %c64 = arith.constant 64 : index
    %c0_20 = arith.constant 0 : index
    %39 = vector.load %arg4[%c64, %c0_20] : memref<71x384xbf16, #tpu.memory_space<vmem>>, vector<7x384xbf16>
    %cst_21 = arith.constant dense<0.000000e+00> : vector<8x384xf32>
    %40 = tpu.matmul %38, %39, %cst_21 {dimension_numbers = #tpu.dot_dimension_numbers<[1], [0], [0], [1], [0, 0, 1, 1], [], []>} : vector<8x7xbf16>, vector<7x384xbf16>, vector<8x384xf32> -> vector<8x384xf32>
    %c0_22 = arith.constant 0 : index
    %c0_23 = arith.constant 0 : index
    %41 = vector.load %arg7[%c0_22, %c0_23] : memref<80x18xbf16, #tpu.memory_space<vmem>>, vector<80x10xbf16>
    %c0_24 = arith.constant 0 : index
    %c10 = arith.constant 10 : index
    %42 = vector.load %arg7[%c0_24, %c10] : memref<80x18xbf16, #tpu.memory_space<vmem>>, vector<80x8xbf16>
    %43 = arith.truncf %27 : vector<10x384xf32> to vector<10x384xbf16>
    %cst_25 = arith.constant dense<0.000000e+00> : vector<80x384xf32>
    %44 = tpu.matmul %41, %43, %cst_25 {dimension_numbers = #tpu.dot_dimension_numbers<[1], [0], [0], [1], [0, 0, 1, 1], [], []>} : vector<80x10xbf16>, vector<10x384xbf16>, vector<80x384xf32> -> vector<80x384xf32>
    %45 = arith.truncf %40 : vector<8x384xf32> to vector<8x384xbf16>
    %cst_26 = arith.constant dense<0.000000e+00> : vector<80x384xf32>
    %46 = tpu.matmul %42, %45, %cst_26 {dimension_numbers = #tpu.dot_dimension_numbers<[1], [0], [0], [1], [0, 0, 1, 1], [], []>} : vector<80x8xbf16>, vector<8x384xbf16>, vector<80x384xf32> -> vector<80x384xf32>
    %47 = arith.addf %44, %46 : vector<80x384xf32>
    %c0_27 = arith.constant 0 : index
    %c256 = arith.constant 256 : index
    %48 = vector.load %arg6[%c0_27, %c256] : memref<1x896xf32, #tpu.memory_space<vmem>>, vector<1x384xf32>
    %49 = vector.broadcast %48 : vector<1x384xf32> to vector<80x384xf32>
    %50 = arith.addf %47, %49 : vector<80x384xf32>
    %cst_28 = arith.constant 0.00999999977 : f32
    %51 = vector.broadcast %cst_28 : f32 to vector<80x384xf32>
    %52 = arith.mulf %51, %50 : vector<80x384xf32>
    %53 = arith.maximumf %50, %52 : vector<80x384xf32>
    %54 = arith.truncf %53 : vector<80x384xf32> to vector<80x384xbf16>
    %c0_29 = arith.constant 0 : index
    %c0_30 = arith.constant 0 : index
    %55 = vector.load %arg5[%c0_29, %c0_30] : memref<384x94xbf16, #tpu.memory_space<vmem>>, vector<384x94xbf16>
    %cst_31 = arith.constant dense<0.000000e+00> : vector<80x94xf32>
    %56 = tpu.matmul %54, %55, %cst_31 {dimension_numbers = #tpu.dot_dimension_numbers<[1], [0], [0], [1], [0, 0, 1, 1], [], []>} : vector<80x384xbf16>, vector<384x94xbf16>, vector<80x94xf32> -> vector<80x94xf32>
    %c0_32 = arith.constant 0 : index
    %c640 = arith.constant 640 : index
    %57 = vector.load %arg6[%c0_32, %c640] : memref<1x896xf32, #tpu.memory_space<vmem>>, vector<1x94xf32>
    %58 = vector.broadcast %57 : vector<1x94xf32> to vector<80x94xf32>
    %59 = arith.addf %56, %58 : vector<80x94xf32>
    %60 = arith.negf %59 : vector<80x94xf32>
    %61 = math.exp %60 : vector<80x94xf32>
    %cst_33 = arith.constant 1.000000e+00 : f32
    %62 = vector.broadcast %cst_33 : f32 to vector<80x94xf32>
    %63 = arith.addf %62, %61 : vector<80x94xf32>
    %64 = arith.divf %62, %63 : vector<80x94xf32>
    %c0_34 = arith.constant 0 : index
    %c768 = arith.constant 768 : index
    %65 = vector.load %arg6[%c0_34, %c768] : memref<1x896xf32, #tpu.memory_space<vmem>>, vector<1x94xf32>
    %66 = vector.broadcast %65 : vector<1x94xf32> to vector<80x94xf32>
    %67 = arith.mulf %64, %66 : vector<80x94xf32>
    %c0_35 = arith.constant 0 : index
    %c0_36 = arith.constant 0 : index
    %c0_37 = arith.constant 0 : index
    %68 = vector.load %arg8[%c0_35, %c0_36, %c0_37] : memref<1x80x94xf32, #tpu.memory_space<vmem>>, vector<1x80x94xf32>
    %69 = vector.shape_cast %68 : vector<1x80x94xf32> to vector<80x94xf32>
    %70 = vector.shape_cast %67 : vector<80x94xf32> to vector<1x80x94xf32>
    tpu.vector_store %arg8[%c0_35, %c0_36, %c0_37], %70 {strides = array<i32>} : memref<1x80x94xf32, #tpu.memory_space<vmem>>, vector<1x80x94xf32>,
    return
  }
  func.func @transform_0(%arg0: i32) -> (i32, i32, i32) {
    %c0_i32 = arith.constant 0 : i32
    %c0_i32_0 = arith.constant 0 : i32
    %c0_i32_1 = arith.constant 0 : i32
    return %arg0, %c0_i32, %c0_i32_0 : i32, i32, i32
  }
  func.func @transform_1(%arg0: i32) -> (i32, i32, i32) {
    %c0_i32 = arith.constant 0 : i32
    %c0_i32_0 = arith.constant 0 : i32
    %c0_i32_1 = arith.constant 0 : i32
    return %arg0, %c0_i32, %c0_i32_0 : i32, i32, i32
  }
  func.func @transform_2(%arg0: i32) -> (i32, i32) {
    %c0_i32 = arith.constant 0 : i32
    %c0_i32_0 = arith.constant 0 : i32
    %c0_i32_1 = arith.constant 0 : i32
    return %c0_i32, %c0_i32_0 : i32, i32
  }
  func.func @transform_3(%arg0: i32) -> (i32, i32) {
    %c0_i32 = arith.constant 0 : i32
    %c0_i32_0 = arith.constant 0 : i32
    %c0_i32_1 = arith.constant 0 : i32
    return %c0_i32, %c0_i32_0 : i32, i32
  }
  func.func @transform_4(%arg0: i32) -> (i32, i32) {
    %c0_i32 = arith.constant 0 : i32
    %c0_i32_0 = arith.constant 0 : i32
    %c0_i32_1 = arith.constant 0 : i32
    return %c0_i32, %c0_i32_0 : i32, i32
  }
  func.func @transform_5(%arg0: i32) -> (i32, i32) {
    %c0_i32 = arith.constant 0 : i32
    %c0_i32_0 = arith.constant 0 : i32
    %c0_i32_1 = arith.constant 0 : i32
    return %c0_i32, %c0_i32_0 : i32, i32
  }
  func.func @transform_6(%arg0: i32) -> (i32, i32) {
    %c0_i32 = arith.constant 0 : i32
    %c0_i32_0 = arith.constant 0 : i32
    %c0_i32_1 = arith.constant 0 : i32
    return %c0_i32, %c0_i32_0 : i32, i32
  }
  func.func @transform_7(%arg0: i32) -> (i32, i32, i32) {
    %c0_i32 = arith.constant 0 : i32
    %c0_i32_0 = arith.constant 0 : i32
    %c0_i32_1 = arith.constant 0 : i32
    return %arg0, %c0_i32, %c0_i32_0 : i32, i32, i32
  }
}

</mosaic_0001>

<bundles_post_ra>
// kernel: _lambda_.1
= control target key start
LH: loop header
LB: loop body
LE: loop exit
PB: predicated region body
PF: predicated region fallthrough
CT: control target
= control target key end

     0   :  { %12 = vsyncpa [#allocation3], 0  ;;  %s2964_s0 = inlined_call_operand.vmem [shape: f32[2,1,16], index: 0, kind: input, shape index: {}]   ;;  %s2965_s1 = inlined_call_operand.vmem [shape: f32[2,8,12], index: 1, kind: input, shape index: {}]   ;;  %s2966_s2 = inlined_call_operand.hbm [shape: f32[28,50], index: 2, kind: input, shape index: {}]   ;;  %s2967_s3 = inlined_call_operand.hbm [shape: bf16[71,384], index: 3, kind: input, shape index: {}]   ;;  %s2968_s4 = inlined_call_operand.hbm [shape: bf16[384,94], index: 4, kind: input, shape index: {}]   ;;  %s2969_s5 = inlined_call_operand.vmem [shape: f32[1,896], index: 5, kind: input, shape index: {}]   ;;  %s2970_s6 = inlined_call_operand.hbm [shape: bf16[80,18], index: 6, kind: input, shape index: {}]   ;;  %s2971_s7 = inlined_call_operand.vmem [shape: f32[2,80,94], index: 7, kind: output, shape index: {}]  }
   0x1   :  { %13 = vsyncpa [#allocation5], 0 }
   0x2   :  { %14 = vsyncpa [#allocation8], 0  ;;  %s2576_s24 = smov 0  }
   0x3 LB: > { %s2519_s25 = smov [#allocation4]   ;;  %s2582_s27 = sadd.s32 4294967295, %s2517_s24   ;;  %s2517_s24 = sphi %s2576_s24, %s20_s24  }
   0x4   : > { %s233_s26 = sshll.u32 %s2519_s25, 4  ;;  %p1907_p0 = scmp.ge.s32.totalorder %s2517_s24, 1  ;;  %s2587_s26 = int_to_ptr.vmem [resolvable:$true] %s233_s26 }
   0x5   : > { %p208_p1 = scmp.lt.s32.totalorder %s2517_s24, 3  ;;  %p2972_p2 = scmp.eq.s32.totalorder %s2582_s27, 0 }
   0x6   : > { %s2520_s29 = smov [#allocation2]   ;;  %s2521_s9 = smov [#allocation6]  }
   0x7   : > { %p2589_p3 = pnand %p1907_p0, %p208_p1  ;;  %s220_s30 = sshll.u32 %s2520_s29, 4  ;;  %s2595_s30 = int_to_ptr.vmem [resolvable:$true] %s220_s30 }
   0x8   : > { %s2603_s10 = sshll.u32 %s2521_s9, 4  ;;  %s2387_s13 = scalar_lea.hbm %s2967_s3, 1728  ;;  %s247_s10 = int_to_ptr.vmem [resolvable:$true] %s2603_s10 }
   0x9   : > { %s2974_s28 = scalar_select %p2589_p3, 1, 0 }
   0xa   : > { %p2254_p4 = pneg %p2589_p3  ;;  %p2388_p6 = scmp.ne.s32.totalorder %s2967_s3, %s2387_s13 }
   0xb   : > { %p2394_p10 = scmp.lt.u32.totalorder %s2387_s13, %s2967_s3 }
   0xc   : > { %p2599_p5 = pnand %p2972_p2, %p2254_p4 }
   0xe   : > { %p2613_p7 = pneg %p2599_p5 }
  0x10   : > { %p2390_p8 = pnand %p2613_p7, %p2388_p6 }
  0x12   : > { %p2391_p9 = pneg %p2390_p8 }
  0x14   : > { %p2396_p11 = pnand %p2394_p10, %p2391_p9 }
  0x16   : > { %2399 = shalt.err (!%p2396_p11)
}
  0x17   : > { %s2400_s19 = scalar_lea.vmem %s2587_s26, 1728  ;;  %p2408_p1 = scmp.lt.s32.totalorder %s2587_s26, %s2587_s26 }
  0x18   : > { %p2401_p12 = scmp.ne.s32.totalorder %s2587_s26, %s2400_s19  ;;  %p2409_p4 = scmp.lt.s32.totalorder %s2400_s19, %s2400_s19 }
  0x1a   : > { %p2403_p13 = pnand %p2401_p12, %p2613_p7  ;;  %p2410_p6 = por %p2409_p4, %p2408_p1 }
  0x1c   : > { %p2404_p0 = pneg %p2403_p13 }
  0x1e   : > { %p2411_p8 = pnand %p2410_p6, %p2404_p0 }
  0x20   : > { %2414 = shalt.err (!%p2411_p8)
}
  0x21   : > { %s2522_s20 = smov 192   ;;  %s2523_s21 = smov 12  }
  0x22   : > { %2260 = dma.hbm_to_vmem [thread:$0]  (!%p2599_p5), %s2967_s3, 1728, %s2587_s26, [#allocation5], %s2522_s20, %s2522_s20, %s2523_s21  }
  0x23   : > { %s2415_s9 = scalar_lea.hbm %s2966_s2, 512 }
  0x24   : > { %p2416_p9 = scmp.ne.s32.totalorder %s2966_s2, %s2415_s9  ;;  %p2422_p12 = scmp.lt.u32.totalorder %s2415_s9, %s2966_s2 }
  0x26   : > { %p2418_p10 = pnand %p2416_p9, %p2613_p7 }
  0x28   : > { %p2419_p11 = pneg %p2418_p10 }
  0x2a   : > { %p2424_p13 = pnand %p2422_p12, %p2419_p11 }
  0x2c   : > { %2427 = shalt.err (!%p2424_p13)
}
  0x2d   : > { %s2428_s26 = scalar_lea.vmem %s2595_s30, 512  ;;  %p2436_p6 = scmp.lt.s32.totalorder %s2595_s30, %s2595_s30 }
  0x2e   : > { %p2429_p0 = scmp.ne.s32.totalorder %s2595_s30, %s2428_s26  ;;  %p2437_p8 = scmp.lt.s32.totalorder %s2428_s26, %s2428_s26 }
  0x30   : > { %p2431_p1 = pnand %p2429_p0, %p2613_p7  ;;  %p2438_p9 = por %p2437_p8, %p2436_p6 }
  0x32   : > { %p2432_p4 = pneg %p2431_p1 }
  0x34   : > { %p2439_p10 = pnand %p2438_p9, %p2432_p4 }
  0x36   : > { %2442 = shalt.err (!%p2439_p10)
}
  0x37   : > { %s2524_s15 = smov 128   ;;  %s2525_s17 = smov 8  }
  0x38   : > { %2257 = dma.hbm_to_vmem [thread:$0]  (!%p2599_p5), %s2966_s2, 512, %s2595_s30, [#allocation3], %s2524_s15, %s2524_s15, %s2525_s17  }
  0x39   : > { %s2443_s22 = scalar_lea.hbm %s2968_s4, 3072 }
  0x3a   : > { %p2444_p11 = scmp.ne.s32.totalorder %s2968_s4, %s2443_s22  ;;  %p2450_p0 = scmp.lt.u32.totalorder %s2443_s22, %s2968_s4 }
  0x3c   : > { %p2446_p12 = pnand %p2444_p11, %p2613_p7 }
  0x3e   : > { %p2447_p13 = pneg %p2446_p12 }
  0x40   : > { %p2452_p1 = pnand %p2450_p0, %p2447_p13 }
  0x42   : > { %2455 = shalt.err (!%p2452_p1)
}
  0x43   : > { %s2456_s11 = scalar_lea.vmem %s247_s10, 3072  ;;  %p2464_p9 = scmp.lt.s32.totalorder %s247_s10, %s247_s10 }
  0x44   : > { %p2457_p4 = scmp.ne.s32.totalorder %s247_s10, %s2456_s11  ;;  %p2465_p10 = scmp.lt.s32.totalorder %s2456_s11, %s2456_s11 }
  0x46   : > { %p2459_p6 = pnand %p2457_p4, %p2613_p7  ;;  %p2466_p2 = por %p2465_p10, %p2464_p9 }
  0x48   : > { %p2460_p8 = pneg %p2459_p6 }
  0x4a   : > { %p2467_p3 = pnand %p2466_p2, %p2460_p8 }
  0x4c   : > { %2470 = shalt.err (!%p2467_p3)
}
  0x4d   : > { %s2526_s30 = smov 64   ;;  %s2527_s12 = smov 4  }
  0x4e   : > { %2263 = dma.hbm_to_vmem [thread:$0]  (!%p2599_p5), %s2968_s4, 3072, %s247_s10, [#allocation5], %s2526_s30, %s2526_s30, %s2527_s12  }
  0x4f   : > { %s2528_s26 = smov [#allocation7]   ;;  %s2471_s19 = scalar_lea.hbm %s2970_s6, 640 }
  0x50   : > { %s262_s15 = sshll.u32 %s2528_s26, 4  ;;  %p2472_p2 = scmp.ne.s32.totalorder %s2970_s6, %s2471_s19  ;;  %s263_s15 = int_to_ptr.vmem [resolvable:$true] %s262_s15 }
  0x51   : > { %p2478_p12 = scmp.lt.u32.totalorder %s2471_s19, %s2970_s6 }
  0x52   : > { %p2474_p3 = pnand %p2472_p2, %p2613_p7 }
  0x54   : > { %p2475_p11 = pneg %p2474_p3 }
  0x56   : > { %p2480_p13 = pnand %p2478_p12, %p2475_p11 }
  0x58   : > { %2483 = shalt.err (!%p2480_p13)
}
  0x59   : > { %s2484_s10 = scalar_lea.vmem %s263_s15, 640  ;;  %p2492_p6 = scmp.lt.s32.totalorder %s263_s15, %s263_s15 }
  0x5a   : > { %p2485_p0 = scmp.ne.s32.totalorder %s263_s15, %s2484_s10  ;;  %p2493_p8 = scmp.lt.s32.totalorder %s2484_s10, %s2484_s10 }
  0x5c   : > { %p2487_p1 = pnand %p2485_p0, %p2613_p7  ;;  %p2494_p9 = por %p2493_p8, %p2492_p6 }
  0x5e   : > { %p2488_p4 = pneg %p2487_p1 }
  0x60   : > { %p2495_p10 = pnand %p2494_p9, %p2488_p4 }
  0x62   : > { %2498 = shalt.err (!%p2495_p10)
}
  0x63   : > { %2266 = dma.hbm_to_vmem [thread:$0]  (!%p2599_p5), %s2970_s6, 640, %s263_s15, [#allocation8], %s2526_s30, %s2526_s30, %s2527_s12  }
  0x64   : > { %p2977_p2 = scmp.ne.s32.totalorder %s2974_s28, 0 }
  0x65   : > { %p2978_p3 = scmp.eq.s32.totalorder (!%p2977_p2), %s2582_s27, 0 }
  0x66   : > { %291 = sbr.rel (%p2977_p2) target bundleno = 1340 (0x53c), region = 48 }
  0x6d   : > { %2504 = dma.done.wait (%p2978_p3), [#allocation3], 512   ;;  %p2979_p7 = pmov %p2978_p3 }
  0x6e   : > { %p2980_p11 = pmov %p2978_p3 }
  0x6f   : > { %2506 = vsyncadd (%p2979_p7), [#allocation3], 4294966784 }
  0x70   : > { %2508 = dma.done.wait (%p2980_p11), [#allocation5], 4800   ;;  %p2981_p12 = pmov %p2978_p3 }
  0x71   : > { %p2982_p13 = pmov %p2978_p3 }
  0x72   : > { %2510 = vsyncadd (%p2981_p12), [#allocation5], 4294962496 }
  0x73   : > { %2512 = dma.done.wait (%p2982_p13), [#allocation8], 640   ;;  %p2983_p5 = pmov %p2978_p3 }
  0x74   : > { %p337_p0 = scmp.lt.s32.totalorder %s2582_s27, 1  ;;  %vm365_vm0 = vcmask 130048   ;;  %v356_v0 = vld [vmem:[#allocation2] sm:$0xff]  ;;  %v357_v1 = vld [vmem:[#allocation2 + $0x8] sm:$0xff]  ;;  %v2529_v8 = vmov 0.0   ;;  %vm539_vm1 = vcmask 1040384   ;;  %v447_v22 = vlaneseq }
  0x75   : > { %2514 = vsyncadd (%p2983_p5), [#allocation8], 4294966656  ;;  %v2209_v3 = vpack.c.bf16 %v357_v1, %v356_v0  ;;  %v2300_v4 = vld [vmem:[#allocation4 + $0x4] ss:$12 sps:$4 sm:$0xff]   ;;  %v2302_v5 = vld [vmem:[#allocation4] ss:$12 sps:$4 sm:$0xff]  }
  0x76   : > { %s2985_s27 = smov (!%p337_p0, %s2582_s27), 1  ;;  %549 = vmatprep.subr.bf16.mxu1 %v2300_v4  ;;  %v2303_v6 = vld [vmem:[#allocation4 + $0x8] ss:$12 sps:$4 sm:$0xff]   ;;  %v2306_v9 = vld [vmem:[#allocation4 + $0x18] ss:$12 sps:$4 sm:$0xff]   ;;  %v2530_v20 = vmov 0  }
  0x77   : > { %s339_s16 = scalar_lea.vmem %s2964_s0, %s2985_s27  ;;  %2210 = vmatprep.subr.bf16.mxu0 %v2209_v3  ;;  %550 = vmatpush1.bf16.msra.mxu1 %v2302_v5  ;;  %v2304_v7 = vld [vmem:[#allocation4 + $0x1c] ss:$12 sps:$4 sm:$0xff]   ;;  %v2307_v10 = vld [vmem:[#allocation4 + $0x20] ss:$12 sps:$4 sm:$0xff]   ;;  %v2311_v13 = vld [vmem:[#allocation4 + $0x38] ss:$12 sps:$4 sm:$0xff]  }
  0x78   : > { %v1920_v2 = vld [vmem:[%s339_s16] ss:$0 sm:$0xff]  ;;  %2212 = vmatpush3.bf16.msra.mxu0 %v2209_v3  ;;  %551 = vmatprep.subr.bf16.mxu1 %v2304_v7  ;;  %v2310_v12 = vld [vmem:[#allocation4 + $0x30] ss:$12 sps:$4 sm:$0xff]   ;;  %v477_v14 = vld [vmem:[#allocation4 + $0x48] sm:$0x11] }
  0x79   : > { %2101 = vmatprep.mubr.msk.f32.mxu0 %vm365_vm0, %v1920_v2  ;;  %2104 = vmatprep.subr.bf16.mxu0 %v2529_v8  ;;  %v2308_v11 = vld [vmem:[#allocation4 + $0x34] ss:$12 sps:$4 sm:$0xff]   ;;  %v1934_v15 = vcombine.high %v477_v14, %v477_v14  ;;  %v1933_v16 = vcombine.low %v477_v14, %v477_v14  ;;  %v2314_v17 = vld [vmem:[#allocation4 + $0x50] ss:$0 sps:$4 sm:$0x11]   ;;  %vm2531_vm2 = vmmov 0  }
  0x7a   : > { %v547_v19 = vsel %vm539_vm1, %v2314_v17, 0  ;;  %581 = vmatprep.mubr.bf16.mxu1 %v2530_v20  ;;  %v2532_v21 = vmov 0.0|0.0   ;;  %v2725_v23 = vshrl.u32 %v447_v22, 7  ;;  %v451_v27 = vand.u32 127, %v447_v22  ;;  %v1921_v29 = vld [vmem:[%s2969_s5] ss:$0 sm:$0xff] }
  0x7b   : > { %2102 = vmatmul.mubr.msk.f32.vlgmr.msra.gmra.mrb[0].mxu0 %vm365_vm0, %v1920_v2  ;;  %552 = vmatpush1.bf16.msra.mxu1 %v2306_v9  ;;  %v541_v18 = vsel %vm539_vm1, %v1933_v16, 0  ;;  %v634_v38 = vld [vmem:[#allocation2 + $0x10] sm:$0xff]  ;;  %v635_v39 = vld [vmem:[#allocation2 + $0x18] sm:$0xf]  ;;  %vm647_vm9 = vcmask 1043456   ;;  %vm535_vm10 = vcmask 408576  }
  0x7c   : > { %2105 = vmatpush3.bf16.msra.mxu0 %v2303_v6  ;;  %553 = vmatprep.subr.bf16.mxu1 %v2308_v11  ;;  %v449_v24 = vadd.s32 8, %v2725_v23  ;;  %v452_v26 = vmul.u32 5, %v2725_v23  ;;  %v2214_v43 = vpack.c.bf16 %v635_v39, %v634_v38  ;;  %vm2533_vm11 = vmmov 1   ;;  %s1918_s30 = sshll.u32 %s2985_s27, 3  ;;  %v724_v46 = vld [vmem:[#allocation4 + $0x60] sm:$0xff]  ;;  %v2745_v56 = vld [vmem:[#allocation7] sm:$0xff]  }
  0x7d   : > { %2106 = vmatprep.subr.bf16.mxu0 %v2529_v8  ;;  %2112 = vmatprep.mubr.msk.bf16.mxu0 %vm2531_vm2, %v2529_v8  ;;  %vm2215_vm12 = vmpackc.low %vm647_vm9, %vm2533_vm11  ;;  %s343_s14 = scalar_lea.vmem %s2965_s1, %s1918_s30  ;;  %vm643_vm13 = vcmask 97280   ;;  %vm738_vm14 = vcmask 1042432   ;;  %v1943_v47 = vcombine.high %v724_v46, %v724_v46  ;;  %v2534_v48 = vmov 65535   ;;  %v2317_v52 = vld [vmem:[#allocation4 + $0x68] ss:$0 sps:$4 sm:$0xff]   ;;  %v2747_v57 = vld [vmem:[#allocation7 + $0x10] sm:$0xff]  }
  0x7e   : > { %v453_v25 = vmul.u32 5, %v449_v24  ;;  %v456_v30 = vadd.s32 5, %v452_v26  ;;  %vm454_vm5 = vcmp.ge.s32.totalorder %v451_v27, %v452_v26  ;;  %v633_v45 = vld [vmem:[%s343_s14] sm:$0xff]  ;;  %v739_v49 = vsel %vm738_vm14, 4294967295, %v2534_v48  ;;  %s2535_s26 = smov 118   ;;  %v2750_v58 = vld [vmem:[#allocation7 + $0x8] sm:$0xff]  }
  0x7f   : > { %554 = vmatpush1.bf16.msra.mxu1 %v2310_v12  ;;  %v1942_v50 = vcombine.low %v724_v46, %v724_v46  ;;  %v740_v51 = vsel %vm647_vm9, %v739_v49, 0  ;;  %872 = vrot.lane.b32.xlu0 %v2745_v56, %s2535_s26  ;;  %v2753_v59 = vld [vmem:[#allocation7 + $0x18] sm:$0xff]   ;;  %v2757_v60 = vld [vmem:[#allocation7 + $0x20] sm:$0xff]   ;;  %v1939_v9 = vld [vmem:[%s2969_s5 + $0x1] ss:$0 sm:$0xff]  ;;  %vm734_vm15 = vcmask 56320  }
  0x80   : > { %2107 = vmatpush3.bf16.msra.mxu0 %v2307_v10  ;;  %1936 = vmatprep.subr.msk.bf16.mxu1 %vm539_vm1, %v1934_v15  ;;  %v457_v28 = vadd.s32 5, %v453_v25  ;;  %vm455_vm3 = vcmp.ge.s32.totalorder %v451_v27, %v453_v25  ;;  %vm458_vm6 = vcmp.lt.s32.totalorder %v451_v27, %v456_v30  ;;  %v745_v53 = vand.u32 %v1943_v47, %v740_v51  ;;  %v2323_v38 = vld [vmem:[#allocation6 + $0x40] sm:$0xff]   ;;  %v2332_v46 = vld [vmem:[#allocation6 + $0x58] sm:$0xff]   ;;  %s2237_s22 = smul.u32 80, %s2985_s27 }
  0x81   : > { %2108 = vmatprep.subr.bf16.mxu0 %v2529_v8  ;;  %vm460_vm8 = vmand %vm454_vm5, %vm458_vm6  ;;  %v742_v54 = vand.u32 %v1942_v50, %v740_v51  ;;  %v748_v55 = vand.u32 %v2317_v52, %v740_v51  ;;  %876 = vrot.lane.b32.xlu1 %v2747_v57, %s2535_s26  ;;  %vm1079_vm0 = vcmask 1044480   ;;  %vm882_vm1 = vcmask 64512   ;;  %v2324_v39 = vld [vmem:[#allocation6] sm:$0xff]   ;;  %v2333_v47 = vld [vmem:[#allocation6 + $0x18] sm:$0xff]  }
  0x82   : > { %vm459_vm4 = vcmp.lt.s32.totalorder %v451_v27, %v457_v28  ;;  %v2334_v48 = vld [vmem:[#allocation6 + $0x98] sm:$0xff]   ;;  %v2335_v49 = vld [vmem:[#allocation6 + $0x60] sm:$0xff]   ;;  %v2338_v52 = vld [vmem:[#allocation6 + $0x68] sm:$0xff]   ;;  %s2927_s29 = scalar_lea.vmem %s2971_s7, %s2237_s22 }
  0x83   : > { %556 = vmatpush1.bf16.msra.mxu1 %v541_v18  ;;  %vm461_vm7 = vmand %vm455_vm3, %vm459_vm4  ;;  %874 = vrot.lane.b32.xlu0 %v2750_v58, %s2535_s26  ;;  %vm1063_vm3 = vcmask 80896   ;;  %v2336_v50 = vld [vmem:[#allocation6 + $0xa0] sm:$0xff]  }
  0x84   : > { %2109 = vmatpush3.bf16.msra.mxu0 %v2311_v13  ;;  %2213 = vmatprep.subr.bf16.mxu1 %v2532_v21  ;;  %v2337_v51 = vld [vmem:[#allocation6 + $0x20] sm:$0xff]  }
  0x85   : > { %2110 = vmatprep.subr.bf16.mxu0 %v2529_v8  ;;  %878 = vrot.lane.b32.xlu1 %v2753_v59, %s2535_s26 }
  0x87   : > { %880 = vrot.lane.b32.xlu0 %v2757_v60, %s2535_s26 }
  0x88   : > { %2111 = vmatpush3.bf16.msra.mxu0 %v547_v19 }
  0x89   : > { %750 = vmatprep.subr.bf16.mxu0 %v745_v53  ;;  %v2339_v53 = vld [vmem:[#allocation6 + $0xa8] sm:$0xff]  }
 0x14e   : > { %v2103_v31 = vpop.f32.mrb[0].mxu0 }
 0x14f   : > { %v440_v32 = vadd.f32 %v2103_v31, %v1921_v29  ;;  %v434_v33 = vpop.f32.mrb[1].mxu0  ;;  %v873_v31 = vpop.permute.xlu0 %872 }
 0x150   : > { %v435_v34 = vadd.f32 %v1921_v29, %v434_v33 }
 0x151   : > { %v444_v35 = vmul.f32 0.01, %v440_v32 }
 0x152   : > { %v443_v36 = vmul.f32 0.01, %v435_v34 }
 0x153   : > { %v446_v37 = vmax.f32 %v440_v32, %v444_v35  ;;  %v877_v35 = vpop.permute.xlu1 %876 }
 0x154   : > { %v445_v40 = vmax.f32 %v435_v34, %v443_v36  ;;  %v875_v34 = vpop.permute.xlu0 %874 }
 0x155   : > { %v463_v41 = vsel %vm461_vm7, %v446_v37, 0.0 }
 0x156   : > { %v462_v42 = vsel %vm460_vm8, %v445_v40, 0.0  ;;  %v2325_v40 = vld [vmem:[#allocation6 + $0x80] sm:$0xff]  }
 0x157   : > { %v464_v44 = vpack.c.bf16 %v463_v41, %v462_v42  ;;  %v879_v36 = vpop.permute.xlu1 %878  ;;  %v2326_v41 = vld [vmem:[#allocation6 + $0x48] sm:$0xff]  }
 0x158   : > { %v881_v37 = vpop.permute.xlu0 %880  ;;  %v2327_v42 = vld [vmem:[#allocation6 + $0x8] sm:$0xff]  }
 0x159   : > { %1937 = vmatmul.mubr.msk.bf16.vlgmr.msra.gmra.mrb[0].mxu1 %vm535_vm10, %v464_v44  ;;  %2113 = vmatmul.mubr.msk.bf16.vlgmr.msra.gmra.mrb[4].mxu0 %vm535_vm10, %v464_v44  ;;  %v2330_v44 = vld [vmem:[#allocation6 + $0x10] sm:$0xff]  }
 0x15a   : > { %2216 = vmatpush3.bf16.msk.msra.mxu1 %vm2215_vm12, %v2214_v43  ;;  %2120 = vmatprep.mubr.msk.f32.mxu1 %vm2531_vm2, %v2529_v8  ;;  %v2328_v43 = vld [vmem:[#allocation6 + $0x88] sm:$0xff]  }
 0x15b   : > { %2123 = vmatprep.subr.bf16.mxu1 %v2529_v8  ;;  %782 = vmatprep.mubr.bf16.mxu0 %v2530_v20 }
 0x15c   : > { %751 = vmatpush1.bf16.msra.mxu0 %v742_v54  ;;  %v2340_v54 = vld [vmem:[#allocation6 + $0x28] sm:$0xff]  }
 0x161   : > { %2121 = vmatmul.mubr.msk.f32.vlgmr.msra.gmra.mrb[4].mxu1 %vm643_vm13, %v633_v45  ;;  %v2331_v45 = vld [vmem:[#allocation6 + $0x90] sm:$0xff]  }
 0x162   : > { %2125 = vmatprep.mubr.msk.bf16.mxu1 %vm2531_vm2, %v2529_v8  ;;  %2124 = vmatpush3.bf16.msra.mxu1 %v748_v55  ;;  %v2341_v55 = vld [vmem:[#allocation6 + $0x70] sm:$0xff]  }
 0x163   : > { %2129 = vmatprep.subr.bf16.mxu1 %v2529_v8 }
 0x22c   : > { %v583_v61 = vpop.f32.mrb[0].mxu1  ;;  %v626_v62 = vpop.f32.mrb[4].mxu0 }
 0x22d   : > { %v585_v63 = vpop.f32.mrb[1].mxu1  ;;  %v2114_v0 = vpop.f32.mrb[5].mxu0 }
 0x22e   : > { %v587_v1 = vpop.f32.mrb[2].mxu1  ;;  %v629_v2 = vpop.f32.mrb[6].mxu0 }
 0x22f   : > { %v841_v3 = vpack.c.bf16 %v587_v1, %v583_v61  ;;  %v843_v4 = vpack.c.bf16 %v629_v2, %v626_v62  ;;  %v589_v5 = vpop.f32.mrb[3].mxu1  ;;  %v2115_v6 = vpop.f32.mrb[7].mxu0 }
 0x230   : > { %v842_v7 = vpack.c.bf16 %v589_v5, %v585_v63 }
 0x231   : > { %v1087_v32 = vsel %vm1079_vm0, %v843_v4, 0  ;;  %v1081_v33 = vsel %vm1079_vm0, %v841_v3, 0 }
 0x234   : > { %v717_v10 = vpop.f32.mrb[4].mxu1 }
 0x235   : > { %v718_v11 = vadd.f32 %v1939_v9, %v717_v10  ;;  %v2122_v12 = vpop.f32.mrb[5].mxu1 }
 0x237   : > { %v721_v13 = vmul.f32 0.01, %v718_v11 }
 0x239   : > { %v722_v14 = vmax.f32 %v718_v11, %v721_v13 }
 0x23b   : > { %v723_v15 = vpack.c.bf16 %v722_v14, %v722_v14 }
 0x23d   : > { %1945 = vmatmul.mubr.msk.bf16.vlgmr.msra.gmra.mrb[8].mxu0 %vm734_vm15, %v723_v15  ;;  %2126 = vmatmul.mubr.msk.bf16.vlgmr.msra.gmra.mrb[8].mxu1 %vm734_vm15, %v723_v15 }
 0x23e   : > { %2131 = vmatprep.mubr.msk.bf16.mxu1 %vm2531_vm2, %v2529_v8  ;;  %939 = vmatprep.mubr.bf16.mxu0 %v2530_v20 }
 0x310   : > { %v784_v16 = vpop.f32.mrb[8].mxu0  ;;  %v825_v17 = vpop.f32.mrb[8].mxu1 }
 0x311   : > { %v844_v18 = vpack.c.bf16 %v784_v16, %v784_v16  ;;  %v846_v19 = vpack.c.bf16 %v825_v17, %v825_v17  ;;  %v786_v21 = vpop.f32.mrb[9].mxu0  ;;  %v2127_v22 = vpop.f32.mrb[9].mxu1  ;;  %v1249_v16 = vsub.s32 0, %v2725_v23 }
 0x312   : > { %v845_v24 = vpack.c.bf16 %v786_v21, %v786_v21  ;;  %v788_v25 = vpop.f32.mrb[10].mxu0  ;;  %v828_v26 = vpop.f32.mrb[10].mxu1  ;;  %v1257_v21 = vsub.s32 2, %v2725_v23 }
 0x313   : > { %v899_v27 = vsel %vm647_vm9, %v844_v18, 0  ;;  %v905_v28 = vsel %vm647_vm9, %v846_v19, 0  ;;  %v789_v29 = vpop.f32.mrb[11].mxu0  ;;  %v2128_v30 = vpop.f32.mrb[11].mxu1  ;;  %v1245_v18 = vld [vmem:[%s2969_s5 + $0x2] sm:$0x7] }
 0x314   : > { %1952 = vmatprep.subr.msk.bf16.mxu0 %vm647_vm9, %v845_v24  ;;  %2130 = vmatpush3.bf16.msra.mxu1 %v905_v28  ;;  %v1253_v19 = vsub.s32 1, %v2725_v23  ;;  %v2855_v24 = vrot.slane %v1245_v18, %v1249_v16  ;;  %v2859_v26 = vrot.slane %v1245_v18, %v1257_v21 }
 0x315   : > { %908 = vmatpush1.bf16.msra.mxu0 %v899_v27  ;;  %2151 = vmatprep.subr.bf16.mxu1 %v2529_v8 }
 0x316   : > { %1963 = vmatprep.subr.msk.bf16.mxu0 %vm1079_vm0, %v842_v7  ;;  %v2857_v25 = vrot.slane %v1245_v18, %v1253_v19 }
 0x317   : > { %2132 = vmatmul.mubr.msk.bf16.vlgmr.msra.gmra.mrb[12].mxu1 %vm882_vm1, %v873_v31 }
 0x318   : > { %1953 = vmatmul.mubr.msk.bf16.vlgmr.msra.gmra.mrb[12].mxu0 %vm882_vm1, %v873_v31  ;;  %2152 = vmatpush3.bf16.msra.mxu1 %v1087_v32 }
 0x319   : > { %1090 = vmatpush1.bf16.msra.mxu0 %v1081_v33  ;;  %2135 = vmatprep.mubr.msk.bf16.mxu1 %vm2531_vm2, %v2529_v8 }
 0x31a   : > { %949 = vmatprep.mubr.bf16.mxu0 %v2530_v20  ;;  %2173 = vmatprep.subr.bf16.mxu1 %v2529_v8 }
 0x31b   : > { %2038 = vmatprep.subr.bf16.mxu0 %v2323_v38 }
 0x31f   : > { %2136 = vmatmul.mubr.msk.bf16.gmra.mrb[16].mxu1 %vm882_vm1, %v875_v34 }
 0x320   : > { %1954 = vmatmul.mubr.msk.bf16.gmra.mrb[16].mxu0 %vm882_vm1, %v875_v34  ;;  %2139 = vmatprep.mubr.msk.bf16.mxu1 %vm2531_vm2, %v2529_v8 }
 0x321   : > { %959 = vmatprep.mubr.bf16.mxu0 %v2530_v20 }
 0x327   : > { %2140 = vmatmul.mubr.msk.bf16.gmra.mrb[20].mxu1 %vm882_vm1, %v877_v35 }
 0x328   : > { %1955 = vmatmul.mubr.msk.bf16.gmra.mrb[20].mxu0 %vm882_vm1, %v877_v35  ;;  %2143 = vmatprep.mubr.msk.bf16.mxu1 %vm2531_vm2, %v2529_v8 }
 0x329   : > { %969 = vmatprep.mubr.bf16.mxu0 %v2530_v20 }
 0x32f   : > { %2144 = vmatmul.mubr.msk.bf16.gmra.mrb[24].mxu1 %vm882_vm1, %v879_v36 }
 0x330   : > { %1956 = vmatmul.mubr.msk.bf16.gmra.mrb[24].mxu0 %vm882_vm1, %v879_v36  ;;  %2147 = vmatprep.mubr.msk.bf16.mxu1 %vm2531_vm2, %v2529_v8 }
 0x331   : > { %979 = vmatprep.mubr.bf16.mxu0 %v2530_v20 }
 0x337   : > { %2148 = vmatmul.mubr.msk.bf16.gmra.mrb[28].mxu1 %vm882_vm1, %v881_v37 }
 0x338   : > { %1957 = vmatmul.mubr.msk.bf16.gmra.mrb[28].mxu0 %vm882_vm1, %v881_v37  ;;  %2153 = vmatprep.mubr.msk.bf16.mxu1 %vm2531_vm2, %v2529_v8 }
 0x339   : > { %1121 = vmatprep.mubr.bf16.mxu0 %v2530_v20 }
 0x33f   : > { %2154 = vmatmul.mubr.msk.bf16.vlgmr.msra.gmra.mrb[32].mxu1 %vm1063_vm3, %v2745_v56 }
 0x340   : > { %1964 = vmatmul.mubr.msk.bf16.vlgmr.msra.gmra.mrb[12].mxu0 %vm1063_vm3, %v2745_v56  ;;  %2157 = vmatprep.mubr.msk.bf16.mxu1 %vm2531_vm2, %v2529_v8  ;;  %v2342_v56 = vld [vmem:[#allocation6 + $0xb0] sm:$0xff]  }
 0x341   : > { %1131 = vmatprep.mubr.bf16.mxu0 %v2530_v20  ;;  %2039 = vmatpush3.bf16.msra.mxu0 %v2324_v39 }
 0x342   : > { %2174 = vmatpush3.bf16.msra.mxu1 %v2325_v40  ;;  %2040 = vmatprep.subr.bf16.mxu0 %v2326_v41 }
 0x343   : > { %2175 = vmatprep.subr.bf16.mxu1 %v2529_v8 }
 0x345   : > { %2041 = vmatpush3.bf16.msra.mxu0 %v2327_v42 }
 0x346   : > { %2176 = vmatpush3.bf16.msra.mxu1 %v2328_v43 }
 0x347   : > { %2158 = vmatmul.mubr.msk.bf16.gmra.mrb[36].mxu1 %vm1063_vm3, %v2750_v58  ;;  %2177 = vmatprep.subr.bf16.mxu1 %v2529_v8 }
 0x348   : > { %1965 = vmatmul.mubr.msk.bf16.gmra.mrb[16].mxu0 %vm1063_vm3, %v2750_v58  ;;  %2161 = vmatprep.mubr.msk.bf16.mxu1 %vm2531_vm2, %v2529_v8  ;;  %v2344_v58 = vld [vmem:[#allocation6 + $0x78] sm:$0xff]  }
 0x349   : > { %1141 = vmatprep.mubr.bf16.mxu0 %v2530_v20 }
 0x34a   : > { %2178 = vmatpush3.bf16.msra.mxu1 %v2331_v45 }
 0x34b   : > { %2179 = vmatprep.subr.bf16.mxu1 %v2529_v8 }
 0x34e   : > { %2180 = vmatpush3.bf16.msra.mxu1 %v2334_v48 }
 0x34f   : > { %2162 = vmatmul.mubr.msk.bf16.gmra.mrb[40].mxu1 %vm1063_vm3, %v2747_v57  ;;  %2181 = vmatprep.subr.bf16.mxu1 %v2529_v8 }
 0x350   : > { %1966 = vmatmul.mubr.msk.bf16.gmra.mrb[20].mxu0 %vm1063_vm3, %v2747_v57  ;;  %2165 = vmatprep.mubr.msk.bf16.mxu1 %vm2531_vm2, %v2529_v8  ;;  %v2343_v57 = vld [vmem:[#allocation6 + $0x30] sm:$0xff]  }
 0x351   : > { %1151 = vmatprep.mubr.bf16.mxu0 %v2530_v20 }
 0x352   : > { %2182 = vmatpush3.bf16.msra.mxu1 %v2336_v50 }
 0x353   : > { %2183 = vmatprep.subr.bf16.mxu1 %v2529_v8 }
 0x356   : > { %2184 = vmatpush3.bf16.msra.mxu1 %v2339_v53 }
 0x357   : > { %2166 = vmatmul.mubr.msk.bf16.gmra.mrb[44].mxu1 %vm1063_vm3, %v2753_v59  ;;  %2185 = vmatprep.subr.bf16.mxu1 %v2529_v8 }
 0x358   : > { %1967 = vmatmul.mubr.msk.bf16.gmra.mrb[24].mxu0 %vm1063_vm3, %v2753_v59  ;;  %2169 = vmatprep.mubr.msk.bf16.mxu1 %vm2531_vm2, %v2529_v8  ;;  %v2345_v59 = vld [vmem:[#allocation6 + $0xb8] sm:$0xff]  }
 0x359   : > { %1161 = vmatprep.mubr.bf16.mxu0 %v2530_v20  ;;  %v2329_v20 = vld [vmem:[#allocation6 + $0x50] sm:$0xff]  }
 0x35a   : > { %2042 = vmatprep.subr.bf16.mxu0 %v2329_v20  ;;  %2186 = vmatpush3.bf16.msra.mxu1 %v2342_v56 }
 0x35b   : > { %2043 = vmatpush3.bf16.msra.mxu0 %v2330_v44  ;;  %2187 = vmatprep.subr.bf16.mxu1 %v2529_v8 }
 0x35c   : > { %2044 = vmatprep.subr.bf16.mxu0 %v2332_v46 }
 0x35e   : > { %2188 = vmatpush3.bf16.msra.mxu1 %v2345_v59 }
 0x35f   : > { %2170 = vmatmul.mubr.msk.bf16.gmra.mrb[48].mxu1 %vm1063_vm3, %v2757_v60  ;;  %2045 = vmatpush3.bf16.msra.mxu0 %v2333_v47 }
 0x360   : > { %1968 = vmatmul.mubr.msk.bf16.gmra.mrb[28].mxu0 %vm1063_vm3, %v2757_v60  ;;  %2189 = vmatprep.mubr.msk.bf16.mxu1 %vm2531_vm2, %v2529_v8  ;;  %v2346_v60 = vld [vmem:[#allocation6 + $0x38] sm:$0xff]  }
 0x361   : > { %2046 = vmatprep.subr.bf16.mxu0 %v2335_v49 }
 0x363   : > { %2047 = vmatpush3.bf16.msra.mxu0 %v2337_v51 }
 0x364   : > { %2048 = vmatprep.subr.bf16.mxu0 %v2338_v52 }
 0x367   : > { %2049 = vmatpush3.bf16.msra.mxu0 %v2340_v54 }
 0x368   : > { %2050 = vmatprep.subr.bf16.mxu0 %v2341_v55 }
 0x36b   : > { %2051 = vmatpush3.bf16.msra.mxu0 %v2343_v57 }
 0x36c   : > { %2052 = vmatprep.subr.bf16.mxu0 %v2344_v58 }
 0x36f   : > { %2053 = vmatpush3.bf16.msra.mxu0 %v2346_v60 }
 0x3ea   : > { %v1024_v61 = vpop.f32.mrb[12].mxu1 }
 0x3eb   : > { %v2133_v62 = vpop.f32.mrb[13].mxu1 }
 0x3ec   : > { %v1027_v63 = vpop.f32.mrb[14].mxu1 }
 0x3ed   : > { %v2134_v0 = vpop.f32.mrb[15].mxu1 }
 0x3f2   : > { %v1032_v1 = vpop.f32.mrb[16].mxu1 }
 0x3f3   : > { %v2137_v2 = vpop.f32.mrb[17].mxu1 }
 0x3f4   : > { %v1035_v3 = vpop.f32.mrb[18].mxu1 }
 0x3f5   : > { %v2138_v4 = vpop.f32.mrb[19].mxu1 }
 0x3fa   : > { %v2837_v5 = vpop.f32.mrb[20].mxu1 }
 0x3fb   : > { %v2141_v6 = vpop.f32.mrb[21].mxu1 }
 0x3fc   : > { %v2839_v7 = vpop.f32.mrb[22].mxu1 }
 0x3fd   : > { %v2142_v9 = vpop.f32.mrb[23].mxu1 }
 0x402   : > { %v2841_v10 = vpop.f32.mrb[24].mxu1 }
 0x403   : > { %v2145_v11 = vpop.f32.mrb[25].mxu1 }
 0x404   : > { %v2843_v12 = vpop.f32.mrb[26].mxu1 }
 0x405   : > { %v2146_v13 = vpop.f32.mrb[27].mxu1 }
 0x40a   : > { %v2845_v14 = vpop.f32.mrb[28].mxu1 }
 0x40b   : > { %v2149_v15 = vpop.f32.mrb[29].mxu1 }
 0x40c   : > { %v2848_v17 = vpop.f32.mrb[30].mxu1 }
 0x40d   : > { %v2150_v22 = vpop.f32.mrb[31].mxu1 }
 0x412   : > { %v1206_v27 = vpop.f32.mrb[32].mxu1 }
 0x413   : > { %v1207_v28 = vadd.f32 %v1206_v27, %v1024_v61  ;;  %v1123_v29 = vpop.f32.mrb[12].mxu0  ;;  %v2155_v30 = vpop.f32.mrb[33].mxu1 }
 0x414   : > { %v1262_v31 = vadd.f32 %v2855_v24, %v1123_v29  ;;  %v1125_v32 = vpop.f32.mrb[13].mxu0  ;;  %v1209_v33 = vpop.f32.mrb[34].mxu1 }
 0x415   : > { %v1264_v34 = vadd.f32 %v2859_v26, %v1207_v28  ;;  %v1263_v35 = vadd.f32 %v2857_v25, %v1125_v32  ;;  %v1210_v23 = vadd.f32 %v1209_v33, %v1027_v63  ;;  %v1127_v36 = vpop.f32.mrb[14].mxu0  ;;  %v2156_v37 = vpop.f32.mrb[35].mxu1 }
 0x416   : > { %v1292_v38 = vmul.f32 0.01, %v1262_v31  ;;  %v1265_v39 = vadd.f32 %v2855_v24, %v1127_v36  ;;  %v1129_v40 = vpop.f32.mrb[15].mxu0 }
 0x417   : > { %v1294_v41 = vmul.f32 0.01, %v1264_v34  ;;  %v1267_v42 = vadd.f32 %v2859_v26, %v1210_v23  ;;  %v1266_v43 = vadd.f32 %v2857_v25, %v1129_v40  ;;  %v1293_v20 = vmul.f32 0.01, %v1263_v35 }
 0x418   : > { %v1295_v44 = vmul.f32 0.01, %v1265_v39  ;;  %v1322_v47 = vmax.f32 %v1262_v31, %v1292_v38 }
 0x419   : > { %v1297_v45 = vmul.f32 0.01, %v1267_v42  ;;  %v1296_v46 = vmul.f32 0.01, %v1266_v43  ;;  %v1324_v50 = vmax.f32 %v1264_v34, %v1294_v41  ;;  %v1323_v56 = vmax.f32 %v1263_v35, %v1293_v20 }
 0x41a   : > { %v1325_v48 = vmax.f32 %v1265_v39, %v1295_v44  ;;  %v1214_v49 = vpop.f32.mrb[36].mxu1 }
 0x41b   : > { %v1327_v51 = vmax.f32 %v1267_v42, %v1297_v45  ;;  %v1326_v52 = vmax.f32 %v1266_v43, %v1296_v46  ;;  %v1215_v53 = vadd.f32 %v1214_v49, %v1032_v1  ;;  %v1133_v54 = vpop.f32.mrb[16].mxu0  ;;  %v2159_v55 = vpop.f32.mrb[37].mxu1 }
 0x41c   : > { %v1352_v57 = vpack.c.bf16 %v1325_v48, %v1322_v47  ;;  %v1268_v58 = vadd.f32 %v2855_v24, %v1133_v54  ;;  %v1135_v59 = vpop.f32.mrb[17].mxu0  ;;  %v1217_v60 = vpop.f32.mrb[38].mxu1 }
 0x41d   : > { %v1354_v61 = vpack.c.bf16 %v1327_v51, %v1324_v50  ;;  %v1270_v62 = vadd.f32 %v2859_v26, %v1215_v53  ;;  %v1269_v63 = vadd.f32 %v2857_v25, %v1135_v59  ;;  %v1218_v0 = vadd.f32 %v1217_v60, %v1035_v3  ;;  %v1137_v2 = vpop.f32.mrb[18].mxu0  ;;  %v2160_v4 = vpop.f32.mrb[39].mxu1 }
 0x41e   : > { %v1298_v6 = vmul.f32 0.01, %v1268_v58  ;;  %v1271_v9 = vadd.f32 %v2855_v24, %v1137_v2  ;;  %v1139_v1 = vpop.f32.mrb[19].mxu0  ;;  %v1353_v11 = vpack.c.bf16 %v1326_v52, %v1323_v56 }
 0x41f   : > { %v1299_v13 = vmul.f32 0.01, %v1269_v63  ;;  %v1273_v15 = vadd.f32 %v2859_v26, %v1218_v0  ;;  %v1272_v16 = vadd.f32 %v2857_v25, %v1139_v1  ;;  %2190 = vmatmul.mubr.bf16.vlgmr.msra.gmra.mrb[52].mxu1 %v1354_v61  ;;  %v1300_v18 = vmul.f32 0.01, %v1270_v62 }
 0x420   : > { %v1301_v19 = vmul.f32 0.01, %v1271_v9  ;;  %1598 = vmatprep.mubr.bf16.mxu0 %v1353_v11  ;;  %2193 = vmatprep.mubr.msk.bf16.mxu1 %vm2531_vm2, %v2529_v8  ;;  %v1328_v22 = vmax.f32 %v1268_v58, %v1298_v6 }
 0x421   : > { %v1303_v3 = vmul.f32 0.01, %v1273_v15  ;;  %v1302_v21 = vmul.f32 0.01, %v1272_v16  ;;  %1599 = vmatmul.mubr.bf16.vlgmr.msra.gmra.mrb[32].mxu0 %v1352_v57  ;;  %v1329_v29 = vmax.f32 %v1269_v63, %v1299_v13  ;;  %v1330_v35 = vmax.f32 %v1270_v62, %v1300_v18 }
 0x422   : > { %v1331_v27 = vmax.f32 %v1271_v9, %v1301_v19  ;;  %v1222_v28 = vpop.f32.mrb[40].mxu1 }
 0x423   : > { %v1333_v30 = vmax.f32 %v1273_v15, %v1303_v3  ;;  %v1332_v31 = vmax.f32 %v1272_v16, %v1302_v21  ;;  %v1223_v32 = vadd.f32 %v1222_v28, %v2837_v5  ;;  %v1143_v33 = vpop.f32.mrb[20].mxu0  ;;  %v2163_v34 = vpop.f32.mrb[41].mxu1 }
 0x424   : > { %v1274_v23 = vadd.f32 %v2855_v24, %v1143_v33  ;;  %v1145_v36 = vpop.f32.mrb[21].mxu0  ;;  %v1225_v37 = vpop.f32.mrb[42].mxu1  ;;  %v1355_v38 = vpack.c.bf16 %v1331_v27, %v1328_v22 }
 0x425   : > { %v1276_v39 = vadd.f32 %v2859_v26, %v1223_v32  ;;  %v1275_v40 = vadd.f32 %v2857_v25, %v1145_v36  ;;  %v1226_v41 = vadd.f32 %v1225_v37, %v2839_v7  ;;  %v1147_v42 = vpop.f32.mrb[22].mxu0  ;;  %v1356_v43 = vpack.c.bf16 %v1332_v31, %v1329_v29  ;;  %v2164_v20 = vpop.f32.mrb[43].mxu1 }
 0x426   : > { %v1304_v44 = vmul.f32 0.01, %v1274_v23  ;;  %v1277_v5 = vadd.f32 %v2855_v24, %v1147_v42  ;;  %v1149_v45 = vpop.f32.mrb[23].mxu0  ;;  %v1357_v46 = vpack.c.bf16 %v1333_v30, %v1330_v35 }
 0x427   : > { %v1305_v47 = vmul.f32 0.01, %v1275_v40  ;;  %v1279_v48 = vadd.f32 %v2859_v26, %v1226_v41  ;;  %v1278_v49 = vadd.f32 %v2857_v25, %v1149_v45  ;;  %1606 = vmatprep.mubr.bf16.mxu0 %v1356_v43  ;;  %v1306_v50 = vmul.f32 0.01, %v1276_v39 }
 0x428   : > { %v1307_v51 = vmul.f32 0.01, %v1277_v5  ;;  %2194 = vmatmul.mubr.bf16.gmra.mrb[56].mxu1 %v1357_v46  ;;  %v1334_v7 = vmax.f32 %v1274_v23, %v1304_v44 }
 0x429   : > { %v1309_v52 = vmul.f32 0.01, %v1279_v48  ;;  %v1308_v53 = vmul.f32 0.01, %v1278_v49  ;;  %1607 = vmatmul.mubr.bf16.gmra.mrb[36].mxu0 %v1355_v38  ;;  %2197 = vmatprep.mubr.msk.bf16.mxu1 %vm2531_vm2, %v2529_v8  ;;  %v1335_v56 = vmax.f32 %v1275_v40, %v1305_v47  ;;  %v1336_v62 = vmax.f32 %v1276_v39, %v1306_v50 }
 0x42a   : > { %v1337_v54 = vmax.f32 %v1277_v5, %v1307_v51  ;;  %v1230_v55 = vpop.f32.mrb[44].mxu1 }
 0x42b   : > { %v1339_v57 = vmax.f32 %v1279_v48, %v1309_v52  ;;  %v1338_v58 = vmax.f32 %v1278_v49, %v1308_v53  ;;  %v1231_v59 = vadd.f32 %v1230_v55, %v2841_v10  ;;  %v1153_v60 = vpop.f32.mrb[24].mxu0  ;;  %v2167_v61 = vpop.f32.mrb[45].mxu1 }
 0x42c   : > { %v1280_v63 = vadd.f32 %v2855_v24, %v1153_v60  ;;  %v1155_v0 = vpop.f32.mrb[25].mxu0  ;;  %v1233_v2 = vpop.f32.mrb[46].mxu1  ;;  %v1358_v4 = vpack.c.bf16 %v1337_v54, %v1334_v7 }
 0x42d   : > { %v1282_v6 = vadd.f32 %v2859_v26, %v1231_v59  ;;  %v1281_v9 = vadd.f32 %v2857_v25, %v1155_v0  ;;  %v1234_v1 = vadd.f32 %v1233_v2, %v2843_v12  ;;  %v1157_v11 = vpop.f32.mrb[26].mxu0  ;;  %v1359_v13 = vpack.c.bf16 %v1338_v58, %v1335_v56  ;;  %v2168_v15 = vpop.f32.mrb[47].mxu1 }
 0x42e   : > { %v1310_v16 = vmul.f32 0.01, %v1280_v63  ;;  %v1283_v10 = vadd.f32 %v2855_v24, %v1157_v11  ;;  %v1159_v18 = vpop.f32.mrb[27].mxu0  ;;  %v1360_v19 = vpack.c.bf16 %v1339_v57, %v1336_v62 }
 0x42f   : > { %v1311_v3 = vmul.f32 0.01, %v1281_v9  ;;  %v1285_v21 = vadd.f32 %v2859_v26, %v1234_v1  ;;  %v1284_v22 = vadd.f32 %v2857_v25, %v1159_v18  ;;  %1614 = vmatprep.mubr.bf16.mxu0 %v1359_v13  ;;  %v1312_v27 = vmul.f32 0.01, %v1282_v6 }
 0x430   : > { %v1313_v28 = vmul.f32 0.01, %v1283_v10  ;;  %2198 = vmatmul.mubr.bf16.gmra.mrb[60].mxu1 %v1360_v19  ;;  %v1340_v12 = vmax.f32 %v1280_v63, %v1310_v16 }
 0x431   : > { %v1315_v29 = vmul.f32 0.01, %v1285_v21  ;;  %v1314_v30 = vmul.f32 0.01, %v1284_v22  ;;  %1615 = vmatmul.mubr.bf16.gmra.mrb[40].mxu0 %v1358_v4  ;;  %2201 = vmatprep.mubr.msk.bf16.mxu1 %vm2531_vm2, %v2529_v8  ;;  %v1341_v33 = vmax.f32 %v1281_v9, %v1311_v3  ;;  %v1342_v38 = vmax.f32 %v1282_v6, %v1312_v27 }
 0x432   : > { %v1343_v31 = vmax.f32 %v1283_v10, %v1313_v28  ;;  %v1238_v32 = vpop.f32.mrb[48].mxu1 }
 0x433   : > { %v1345_v34 = vmax.f32 %v1285_v21, %v1315_v29  ;;  %v1344_v35 = vmax.f32 %v1284_v22, %v1314_v30  ;;  %v1239_v23 = vadd.f32 %v1238_v32, %v2845_v14  ;;  %v1163_v36 = vpop.f32.mrb[28].mxu0  ;;  %v2171_v37 = vpop.f32.mrb[49].mxu1 }
 0x434   : > { %v1286_v39 = vadd.f32 %v2855_v24, %v1163_v36  ;;  %v1165_v40 = vpop.f32.mrb[29].mxu0  ;;  %v1241_v41 = vpop.f32.mrb[50].mxu1  ;;  %v1361_v42 = vpack.c.bf16 %v1343_v31, %v1340_v12 }
 0x435   : > { %v1288_v43 = vadd.f32 %v2859_v26, %v1239_v23  ;;  %v1287_v20 = vadd.f32 %v2857_v25, %v1165_v40  ;;  %v1242_v44 = vadd.f32 %v1241_v41, %v2848_v17  ;;  %v1167_v5 = vpop.f32.mrb[30].mxu0  ;;  %v1362_v45 = vpack.c.bf16 %v1344_v35, %v1341_v33  ;;  %v2172_v46 = vpop.f32.mrb[51].mxu1 }
 0x436   : > { %v1316_v47 = vmul.f32 0.01, %v1286_v39  ;;  %v1289_v14 = vadd.f32 %v2855_v24, %v1167_v5  ;;  %v1169_v48 = vpop.f32.mrb[31].mxu0  ;;  %v1363_v49 = vpack.c.bf16 %v1345_v34, %v1342_v38 }
 0x437   : > { %v1318_v50 = vmul.f32 0.01, %v1288_v43  ;;  %v1317_v51 = vmul.f32 0.01, %v1287_v20  ;;  %v1291_v52 = vadd.f32 %v2859_v26, %v1242_v44  ;;  %v1290_v53 = vadd.f32 %v2857_v25, %v1169_v48  ;;  %1622 = vmatprep.mubr.bf16.mxu0 %v1362_v45 }
 0x438   : > { %v1319_v7 = vmul.f32 0.01, %v1289_v14  ;;  %2202 = vmatmul.mubr.bf16.gmra.mrb[64].mxu1 %v1363_v49  ;;  %v1346_v17 = vmax.f32 %v1286_v39, %v1316_v47 }
 0x439   : > { %v1321_v54 = vmul.f32 0.01, %v1291_v52  ;;  %v1320_v55 = vmul.f32 0.01, %v1290_v53  ;;  %1623 = vmatmul.mubr.bf16.gmra.mrb[44].mxu0 %v1361_v42  ;;  %2205 = vmatprep.mubr.msk.bf16.mxu1 %vm2531_vm2, %v2529_v8  ;;  %v1348_v24 = vmax.f32 %v1288_v43, %v1318_v50  ;;  %v1347_v57 = vmax.f32 %v1287_v20, %v1317_v51  ;;  %v2908_v8 = vld [vmem:[%s2969_s5 + $0x5] ss:$0 sm:$0xff] }
 0x43a   : > { %v1349_v56 = vmax.f32 %v1289_v14, %v1319_v7  ;;  %vm1789_vm2 = vcmask 769024  }
 0x43b   : > { %v1351_v58 = vmax.f32 %v1291_v52, %v1321_v54  ;;  %v1350_v59 = vmax.f32 %v1290_v53, %v1320_v55 }
 0x43c   : > { %v1364_v60 = vpack.c.bf16 %v1349_v56, %v1346_v17 }
 0x43d   : > { %v1365_v61 = vpack.c.bf16 %v1350_v59, %v1347_v57  ;;  %v1366_v26 = vpack.c.bf16 %v1351_v58, %v1348_v24 }
 0x43f   : > { %1630 = vmatprep.mubr.bf16.mxu0 %v1365_v61 }
 0x440   : > { %2206 = vmatmul.mubr.bf16.gmra.mrb[68].mxu1 %v1366_v26 }
 0x441   : > { %1631 = vmatmul.mubr.bf16.gmra.mrb[48].mxu0 %v1364_v60 }
 0x4f2   : > { %v1673_v25 = vpop.f32.mrb[52].mxu1 }
 0x4f3   : > { %v2191_v62 = vpop.f32.mrb[53].mxu1 }
 0x4f4   : > { %v2054_v63 = vpop.f32.mrb[32].mxu0  ;;  %v1676_v0 = vpop.f32.mrb[54].mxu1 }
 0x4f5   : > { %v2055_v2 = vpop.f32.mrb[33].mxu0  ;;  %v2192_v4 = vpop.f32.mrb[55].mxu1 }
 0x4f6   : > { %v2056_v6 = vadd.f32 %v2055_v2, %v2054_v63  ;;  %v2057_v9 = vpop.f32.mrb[34].mxu0  ;;  %v2922_v4 = vld [vmem:[%s2969_s5 + $0x6] ss:$0 sm:$0xff] }
 0x4f7   : > { %v2058_v1 = vpop.f32.mrb[35].mxu0 }
 0x4f8   : > { %v1601_v11 = vadd.f32 %v2056_v6, %v2908_v8  ;;  %v2059_v13 = vadd.f32 %v2058_v1, %v2057_v9 }
 0x4fa   : > { %v1674_v15 = vadd.f32 %v1673_v25, %v1601_v11  ;;  %v1604_v16 = vadd.f32 %v2059_v13, %v2908_v8 }
 0x4fb   : > { %v1681_v10 = vpop.f32.mrb[56].mxu1 }
 0x4fc   : > { %v1999_v18 = vmul.f32 -1.442695, %v1674_v15  ;;  %v1677_v19 = vadd.f32 %v1676_v0, %v1604_v16  ;;  %v2060_v3 = vpop.f32.mrb[36].mxu0  ;;  %v2195_v21 = vpop.f32.mrb[57].mxu1 }
 0x4fd   : > { %v2061_v22 = vpop.f32.mrb[37].mxu0  ;;  %v1684_v27 = vpop.f32.mrb[58].mxu1 }
 0x4fe   : > { %2347 = vpow2.f32 %v1999_v18  ;;  %v2000_v28 = vmul.f32 -1.442695, %v1677_v19  ;;  %v2062_v29 = vadd.f32 %v2061_v22, %v2060_v3  ;;  %v2063_v30 = vpop.f32.mrb[38].mxu0  ;;  %v2196_v12 = vpop.f32.mrb[59].mxu1 }
 0x4ff   : > { %v2064_v31 = vpop.f32.mrb[39].mxu0 }
 0x500   : > { %2349 = vpow2.f32 %v2000_v28  ;;  %v1609_v32 = vadd.f32 %v2062_v29, %v2908_v8  ;;  %v2065_v33 = vadd.f32 %v2064_v31, %v2063_v30 }
 0x502   : > { %v1682_v34 = vadd.f32 %v1681_v10, %v1609_v32  ;;  %v1612_v35 = vadd.f32 %v2065_v33, %v2908_v8 }
 0x503   : > { %v1689_v23 = vpop.f32.mrb[60].mxu1 }
 0x504   : > { %v2001_v36 = vmul.f32 -1.442695, %v1682_v34  ;;  %v1685_v37 = vadd.f32 %v1684_v27, %v1612_v35  ;;  %v2066_v38 = vpop.f32.mrb[40].mxu0  ;;  %v2199_v39 = vpop.f32.mrb[61].mxu1 }
 0x505   : > { %v2067_v40 = vpop.f32.mrb[41].mxu0  ;;  %v1692_v41 = vpop.f32.mrb[62].mxu1 }
 0x506   : > { %2351 = vpow2.f32 %v2001_v36  ;;  %v2002_v42 = vmul.f32 -1.442695, %v1685_v37  ;;  %v2068_v43 = vadd.f32 %v2067_v40, %v2066_v38  ;;  %v2069_v20 = vpop.f32.mrb[42].mxu0  ;;  %v2200_v44 = vpop.f32.mrb[63].mxu1 }
 0x507   : > { %v2070_v5 = vpop.f32.mrb[43].mxu0 }
 0x508   : > { %v2348_v45 = vpop.eup %2347  ;;  %2353 = vpow2.f32 %v2002_v42  ;;  %v1617_v46 = vadd.f32 %v2068_v43, %v2908_v8  ;;  %v2071_v47 = vadd.f32 %v2070_v5, %v2069_v20 }
 0x509   : > { %v1742_v14 = vadd.f32 1.0, %v2348_v45 }
 0x50a   : > { %v2350_v48 = vpop.eup %2349  ;;  %v1690_v49 = vadd.f32 %v1689_v23, %v1617_v46  ;;  %v1620_v50 = vadd.f32 %v2071_v47, %v2908_v8 }
 0x50b   : > { %2355 = vrcp.f32 %v1742_v14  ;;  %v1743_v51 = vadd.f32 1.0, %v2350_v48  ;;  %v1697_v52 = vpop.f32.mrb[64].mxu1 }
 0x50c   : > { %v2003_v53 = vmul.f32 -1.442695, %v1690_v49  ;;  %v1693_v7 = vadd.f32 %v1692_v41, %v1620_v50  ;;  %v2072_v54 = vpop.f32.mrb[44].mxu0  ;;  %v2203_v55 = vpop.f32.mrb[65].mxu1 }
 0x50d   : > { %2357 = vrcp.f32 %v1743_v51  ;;  %v2073_v17 = vpop.f32.mrb[45].mxu0  ;;  %v1700_v56 = vpop.f32.mrb[66].mxu1 }
 0x50e   : > { %2359 = vpow2.f32 %v2003_v53  ;;  %v2004_v24 = vmul.f32 -1.442695, %v1693_v7  ;;  %v2074_v57 = vadd.f32 %v2073_v17, %v2072_v54  ;;  %v2075_v58 = vpop.f32.mrb[46].mxu0  ;;  %v2204_v59 = vpop.f32.mrb[67].mxu1 }
 0x50f   : > { %v2076_v60 = vpop.f32.mrb[47].mxu0 }
 0x510   : > { %v2352_v61 = vpop.eup %2351  ;;  %2361 = vpow2.f32 %v2004_v24  ;;  %v1625_v26 = vadd.f32 %v2074_v57, %v2908_v8  ;;  %v2077_v25 = vadd.f32 %v2076_v60, %v2075_v58 }
 0x511   : > { %v1744_v62 = vadd.f32 1.0, %v2352_v61 }
 0x512   : > { %v2354_v63 = vpop.eup %2353  ;;  %v1698_v0 = vadd.f32 %v1697_v52, %v1625_v26  ;;  %v1628_v2 = vadd.f32 %v2077_v25, %v2908_v8 }
 0x513   : > { %2363 = vrcp.f32 %v1744_v62  ;;  %v1745_v6 = vadd.f32 1.0, %v2354_v63  ;;  %v1705_v9 = vpop.f32.mrb[68].mxu1 }
 0x514   : > { %v2005_v1 = vmul.f32 -1.442695, %v1698_v0  ;;  %v1701_v11 = vadd.f32 %v1700_v56, %v1628_v2  ;;  %v2078_v13 = vpop.f32.mrb[48].mxu0  ;;  %v2207_v15 = vpop.f32.mrb[69].mxu1 }
 0x515   : > { %v2356_v16 = vpop.eup %2355  ;;  %2365 = vrcp.f32 %v1745_v6  ;;  %v2079_v10 = vpop.f32.mrb[49].mxu0 }
 0x516   : > { %v1708_v18 = vpop.f32.mrb[70].mxu1  ;;  %v1779_v19 = vmul.f32 %v2356_v16, %v2922_v4  ;;  %2367 = vpow2.f32 %v2005_v1  ;;  %v2006_v3 = vmul.f32 -1.442695, %v1701_v11  ;;  %v2080_v21 = vadd.f32 %v2079_v10, %v2078_v13  ;;  %v2081_v22 = vpop.f32.mrb[50].mxu0 }
 0x517   : > { %v2208_v27 = vpop.f32.mrb[71].mxu1  ;;  %v2358_v28 = vpop.eup %2357 }
 0x518   : > { %v2082_v29 = vpop.f32.mrb[51].mxu0  ;;  %v2360_v30 = vpop.eup %2359  ;;  %1790 = vst.msk [vmem:[%s2927_s29] sm:$0xff] %vm1789_vm2, %v1779_v19  ;;  %v1780_v12 = vmul.f32 %v2358_v28, %v2922_v4  ;;  %2369 = vpow2.f32 %v2006_v3  ;;  %v1633_v31 = vadd.f32 %v2080_v21, %v2908_v8 }
 0x519   : > { %v2083_v32 = vadd.f32 %v2082_v29, %v2081_v22  ;;  %v1746_v33 = vadd.f32 1.0, %v2360_v30 }
 0x51a   : > { %v2362_v34 = vpop.eup %2361  ;;  %1791 = vst.msk [vmem:[%s2927_s29 + $0x8] sm:$0xff] %vm1789_vm2, %v1780_v12  ;;  %v1706_v35 = vadd.f32 %v1705_v9, %v1633_v31 }
 0x51b   : > { %v1636_v23 = vadd.f32 %v2083_v32, %v2908_v8  ;;  %2371 = vrcp.f32 %v1746_v33  ;;  %v1747_v36 = vadd.f32 1.0, %v2362_v34 }
 0x51c   : > { %v2007_v37 = vmul.f32 -1.442695, %v1706_v35 }
 0x51d   : > { %v1709_v38 = vadd.f32 %v1708_v18, %v1636_v23  ;;  %v2364_v39 = vpop.eup %2363  ;;  %2373 = vrcp.f32 %v1747_v36 }
 0x51e   : > { %v1781_v40 = vmul.f32 %v2364_v39, %v2922_v4  ;;  %2375 = vpow2.f32 %v2007_v37 }
 0x51f   : > { %v2008_v41 = vmul.f32 -1.442695, %v1709_v38  ;;  %v2366_v42 = vpop.eup %2365 }
 0x520   : > { %v2368_v43 = vpop.eup %2367  ;;  %1792 = vst.msk [vmem:[%s2927_s29 + $0x10] sm:$0xff] %vm1789_vm2, %v1781_v40  ;;  %v1782_v20 = vmul.f32 %v2366_v42, %v2922_v4 }
 0x521   : > { %2377 = vpow2.f32 %v2008_v41  ;;  %v1748_v8 = vadd.f32 1.0, %v2368_v43 }
 0x522   : > { %v2370_v44 = vpop.eup %2369  ;;  %1793 = vst.msk [vmem:[%s2927_s29 + $0x18] sm:$0xff] %vm1789_vm2, %v1782_v20 }
 0x523   : > { %2379 = vrcp.f32 %v1748_v8  ;;  %v1749_v5 = vadd.f32 1.0, %v2370_v44 }
 0x525   : > { %v2372_v45 = vpop.eup %2371  ;;  %2381 = vrcp.f32 %v1749_v5 }
 0x526   : > { %v1783_v46 = vmul.f32 %v2372_v45, %v2922_v4 }
 0x527   : > { %v2374_v47 = vpop.eup %2373 }
 0x528   : > { %v2376_v14 = vpop.eup %2375  ;;  %1794 = vst.msk [vmem:[%s2927_s29 + $0x20] sm:$0xff] %vm1789_vm2, %v1783_v46  ;;  %v1784_v48 = vmul.f32 %v2374_v47, %v2922_v4 }
 0x529   : > { %v1750_v49 = vadd.f32 1.0, %v2376_v14 }
 0x52a   : > { %1795 = vst.msk [vmem:[%s2927_s29 + $0x28] sm:$0xff] %vm1789_vm2, %v1784_v48 }
 0x52b   : > { %v2378_v50 = vpop.eup %2377  ;;  %2383 = vrcp.f32 %v1750_v49 }
 0x52c   : > { %v1751_v51 = vadd.f32 1.0, %v2378_v50 }
 0x52d   : > { %v2380_v52 = vpop.eup %2379 }
 0x52e   : > { %2385 = vrcp.f32 %v1751_v51  ;;  %v1785_v53 = vmul.f32 %v2380_v52, %v2922_v4 }
 0x52f   : > { %v2382_v7 = vpop.eup %2381 }
 0x530   : > { %1796 = vst.msk [vmem:[%s2927_s29 + $0x30] sm:$0xff] %vm1789_vm2, %v1785_v53  ;;  %v1786_v54 = vmul.f32 %v2382_v7, %v2922_v4 }
 0x532   : > { %1797 = vst.msk [vmem:[%s2927_s29 + $0x38] sm:$0xff] %vm1789_vm2, %v1786_v54 }
 0x535   : > { %v2384_v55 = vpop.eup %2383 }
 0x536   : > { %v1787_v17 = vmul.f32 %v2384_v55, %v2922_v4 }
 0x538   : > { %v2386_v56 = vpop.eup %2385  ;;  %1798 = vst.msk [vmem:[%s2927_s29 + $0x40] sm:$0xff] %vm1789_vm2, %v1787_v17 }
 0x539   : > { %v1788_v24 = vmul.f32 %v2386_v56, %v2922_v4 }
 0x53b   : > { %1799 = vst.msk [vmem:[%s2927_s29 + $0x48] sm:$0xff] %vm1789_vm2, %v1788_v24 }
 0x53c PF: > { %s20_s24 = sadd.s32 1, %s2517_s24  }
 0x53d   : > { %p17_p1 = scmp.ge.s32.totalorder %s20_s24, 4  }
 0x53f   :  { %19 = sbr.rel (!%p17_p1) target bundleno = 3 (0x3), region = 98 }
 0x546   :  { %1821 = vsyncpa [#allocation3], 1 }
 0x547   :  { %1823 = vsyncpa [#allocation3 + $0x1], 1 }
 0x548   :  { %1824 = vsyncpa [#allocation5], 1 }
 0x549   :  { %1825 = vsyncpa [#allocation8], 1 }

</bundles_post_ra>
